<compile_context>
chip_gen: v5e
topology: v5e:2x2
jax: 0.10.0
libtpu: 0.0.40
codegen_flags: <defaults>
</compile_context>

<pallas_src>
import functools

import jax
import jax.numpy as jnp
from jax.experimental import pallas as pl
from jax.experimental.pallas import tpu as pltpu


def _round_up(v, m):
    return (v + m - 1) // m * m


def _choose_tile(dim, preferred, align):
    """Pick (tile, padded_dim) with padded_dim % tile == 0, tile % align == 0,
    tile ~<= preferred, and small padding waste even when dim >> preferred."""
    dim_al = _round_up(max(dim, 1), align)
    nblocks = max(1, -(-dim_al // preferred))
    tile = _round_up(-(-dim_al // nblocks), align)
    return tile, nblocks * tile


# ----------------------------------------------------------------------------
# Kernels.
# ----------------------------------------------------------------------------
def _linear_kernel(x_ref, w_ref, b_ref, o_ref, acc_ref):
    """Tiled matmul; bias is loaded into the f32 accumulator at k == 0.

    Grid = (Mp//tm, Np//tn, Kp//tk); K (reduction) is innermost/"arbitrary";
    the output BlockSpec returns the same (i, j) block for every k, so acc_ref
    accumulates across K.
    """
    k = pl.program_id(2)

    @pl.when(k == 0)
    def _():
        # Bias-init the accumulator (broadcast over rows); epilogue is a pure store.
        acc_ref[...] = jnp.zeros_like(acc_ref) + b_ref[...].astype(jnp.float32)

    # Operands stay in their native (compute) dtype for the MXU; f32 accumulate.
    acc_ref[...] += jnp.dot(x_ref[...], w_ref[...],
                            preferred_element_type=jnp.float32)

    @pl.when(k == pl.num_programs(2) - 1)
    def _():
        o_ref[...] = acc_ref[...].astype(o_ref.dtype)


def _fake_quant_kernel(x_ref, iscale_ref, o_ref, *, inv_s, s, zp):
    """One-pass elementwise: X_dq = dequant(quant(X * input_scale)).

    Kept OUT of the matmul grid so the ~8-op VALU chain runs once per element
    instead of once per N tile.
    """
    x = x_ref[...].astype(jnp.float32) * iscale_ref[...].astype(jnp.float32)
    xq = jnp.clip(jnp.round(x * inv_s) + zp, -128.0, 127.0)
    o_ref[...] = ((xq - zp) * s).astype(o_ref.dtype)


# ----------------------------------------------------------------------------
# One-time parameter preparation (transpose, fold, pad).  NOT per forward.
# ----------------------------------------------------------------------------
def prepare_qdq_linear(weight, bias, input_scale=None, *, simulate_qdq=False,
                       compute_dtype=None, tn=512, tk=512):
    """weight [N, K], bias [N], input_scale [K] or None.

    Returns a params dict holding the padded/transposed weight [Kp, Np],
    padded f32 bias [1, Np], padded input_scale [1, Kp] (simulate path only),
    and the tiling metadata used by qdq_linear_forward.
    """
    weight = jnp.asarray(weight)
    bias = jnp.asarray(bias)
    N, K = weight.shape
    compute_dtype = jnp.dtype(compute_dtype or weight.dtype)

    # Fold / fake-quant decisions are done in f32 for accuracy, cast once at end.
    w_t = weight.astype(jnp.float32).T                        # [K, N]
    iscale = None
    if input_scale is not None:
        s = jnp.asarray(input_scale).reshape(-1).astype(jnp.float32)   # [K]
        if simulate_qdq:
            # Fake-quant must see the scaled activations -> keep scale separate.
            iscale = s.reshape(1, K)
        else:
            # (s * x) @ W^T == x @ (diag(s) @ W^T): fold, drop the runtime mul.
            w_t = s[:, None] * w_t
    elif simulate_qdq:
        iscale = jnp.ones((1, K), jnp.float32)

    tk, Kp = _choose_tile(K, tk, 128)
    tn, Np = _choose_tile(N, tn, 128)

    wp = jnp.pad(w_t, ((0, Kp - K), (0, Np - N))).astype(compute_dtype)
    bp = jnp.pad(bias.astype(jnp.float32).reshape(1, N), ((0, 0), (0, Np - N)))
    if iscale is not None:
        iscale = jnp.pad(iscale, ((0, 0), (0, Kp - K)), constant_values=1.0)

    return dict(w=wp, b=bp, iscale=iscale, K=K, N=N, Kp=Kp, Np=Np, tk=tk,
                tn=tn, compute_dtype=compute_dtype, simulate_qdq=simulate_qdq)


# ----------------------------------------------------------------------------
# Pre-quant pass (simulate_qdq only): X -> fake-quant-dequantized X_dq.
# ----------------------------------------------------------------------------
def _fake_quant(xp, iscale, qscale, qzero, out_dtype, tm, tk):
    Mp, Kp = xp.shape
    kernel = functools.partial(_fake_quant_kernel, inv_s=float(1.0 / qscale),
                               s=float(qscale), zp=float(qzero))
    return pl.pallas_call(
        kernel,
        out_shape=jax.ShapeDtypeStruct((Mp, Kp), out_dtype),
        grid_spec=pltpu.PrefetchScalarGridSpec(
            num_scalar_prefetch=0,
            grid=(Mp // tm, Kp // tk),
            in_specs=[pl.BlockSpec((tm, tk), lambda i, k: (i, k)),
                      pl.BlockSpec((1, tk), lambda i, k: (0, k))],
            out_specs=pl.BlockSpec((tm, tk), lambda i, k: (i, k))),
        compiler_params=pltpu.CompilerParams(
            dimension_semantics=("parallel", "parallel")),
    )(xp, iscale)


# ----------------------------------------------------------------------------
# Forward pass: x [M, K] -> [M, N].
# ----------------------------------------------------------------------------
def qdq_linear_forward(x, params, *, qscale=0.05, qzero=0.0, tm=512):
    M, K = x.shape
    assert K == params["K"], "x last dim must equal in_features"
    Kp, Np, tk, tn = params["Kp"], params["Np"], params["tk"], params["tn"]
    compute_dtype = params["compute_dtype"]
    out_dtype = x.dtype

    # Adaptive M tiling (M=200 -> tm=200, Mp=200; no 28% MXU waste).
    tm, Mp = _choose_tile(M, tm, 8)

    # Pad X only when needed (weight/bias were padded once at prepare time).
    if M == Mp and K == Kp:
        xp = x
    else:
        xp = jnp.pad(x, ((0, Mp - M), (0, Kp - K)))

    if params["simulate_qdq"]:
        # Padded-K cancellation requires |qzero| within int8 range.
        assert -128.0 <= float(qzero) <= 127.0, "qzero must be in int8 range"
        xp = _fake_quant(xp, params["iscale"], qscale, qzero, compute_dtype,
                         tm, tk)
    elif xp.dtype != compute_dtype:
        xp = xp.astype(compute_dtype)

    # v7x megacore: make sure at least one "parallel" axis has >= 2 blocks so
    # both TensorCores get work (no-op on v5e/v6e, single TC).
    if Mp // tm == 1 and Np // tn == 1 and Np >= 256 and (Np // 128) % 2 == 0:
        tn = Np // 2

    grid = (Mp // tm, Np // tn, Kp // tk)

    x_spec = pl.BlockSpec((tm, tk), lambda i, j, k: (i, k))
    w_spec = pl.BlockSpec((tk, tn), lambda i, j, k: (k, j))
    b_spec = pl.BlockSpec((1, tn), lambda i, j, k: (0, j))
    o_spec = pl.BlockSpec((tm, tn), lambda i, j, k: (i, j))

    # VMEM budget derived from the actual double-buffered tile footprint;
    # stays at 32 MiB for default tiles (safe on v7x's 64 MiB physical VMEM).
    cbytes = jnp.dtype(compute_dtype).itemsize
    obytes = jnp.dtype(out_dtype).itemsize
    vbytes = (2 * (tm * tk * cbytes + tk * tn * cbytes + tm * tn * obytes
                   + tn * 4) + tm * tn * 4)
    vmem_limit = int(min(100 * 2 ** 20, max(32 * 2 ** 20, int(vbytes * 1.25))))

    flops = 2 * Mp * Kp * Np
    bytes_accessed = (Mp * Kp * cbytes * (Np // tn)      # X re-streamed per j
                      + Kp * Np * cbytes * (Mp // tm)    # W re-streamed per i
                      + Mp * Np * obytes)

    out = pl.pallas_call(
        _linear_kernel,
        out_shape=jax.ShapeDtypeStruct((Mp, Np), out_dtype),
        grid_spec=pltpu.PrefetchScalarGridSpec(
            num_scalar_prefetch=0,
            grid=grid,
            in_specs=[x_spec, w_spec, b_spec],
            out_specs=o_spec,
            scratch_shapes=[pltpu.VMEM((tm, tn), jnp.float32)]),
        compiler_params=pltpu.CompilerParams(
            dimension_semantics=("parallel", "parallel", "arbitrary"),
            vmem_limit_bytes=vmem_limit),
        cost_estimate=pl.CostEstimate(flops=flops, transcendentals=0,
                                      bytes_accessed=bytes_accessed),
    )(xp, params["w"], params["b"])

    return out[:M, :params["N"]]


if __name__ == "__main__":
    key = jax.random.PRNGKey(0)
    k_x, k_w, k_b, k_s = jax.random.split(key, 4)

    batch, in_features, out_features = 8, 32, 64

    x = jax.random.normal(k_x, (batch, in_features), dtype=jnp.float32)
    # nn.Linear default init-ish (deterministic): U(-1/sqrt(K), 1/sqrt(K))
    bound = 1.0 / (in_features ** 0.5)
    weight = jax.random.uniform(k_w, (out_features, in_features),
                                minval=-bound, maxval=bound, dtype=jnp.float32)
    bias = jax.random.uniform(k_b, (out_features,),
                              minval=-bound, maxval=bound, dtype=jnp.float32)
    # per-input-channel positive scale (smooth-quant style input_scale)
    input_scale = jax.random.uniform(k_s, (in_features,),
                                     minval=0.5, maxval=1.5, dtype=jnp.float32)

    # --- eager (identity-stub) path: scale folded into W^T once at prepare ---
    params = prepare_qdq_linear(weight, bias, input_scale, simulate_qdq=False)
    out = qdq_linear_forward(x, params)
    out = jax.block_until_ready(out)

    ref = (x * input_scale[None, :]) @ weight.T + bias[None, :]
    assert out.shape == (batch, out_features)
    assert out.dtype == x.dtype
    assert jnp.allclose(out, ref, atol=1e-5, rtol=1e-5)

    # --- converted-mode fake-quant path (pre-quant pass + plain matmul) ------
    qscale, qzero = 0.05, 0.0
    params_q = prepare_qdq_linear(weight, bias, input_scale, simulate_qdq=True)
    out_q = qdq_linear_forward(x, params_q, qscale=qscale, qzero=qzero)
    out_q = jax.block_until_ready(out_q)

    xs = x * input_scale[None, :]
    xdq = (jnp.clip(jnp.round(xs / qscale) + qzero, -128.0, 127.0) - qzero) * qscale
    ref_q = xdq @ weight.T + bias[None, :]
    assert jnp.allclose(out_q, ref_q, atol=1e-4, rtol=1e-4)

    print("KERNEL_OK")
</pallas_src>

<mosaic_0001>
module attributes {stable_mosaic.version = 11 : i64} {
  func.func @_linear_kernel(%arg0: i32, %arg1: i32, %arg2: i32, %arg3: memref<8x128xf32, #tpu.memory_space<vmem>>, %arg4: memref<128x128xf32, #tpu.memory_space<vmem>>, %arg5: memref<1x128xf32, #tpu.memory_space<vmem>>, %arg6: memref<8x128xf32, #tpu.memory_space<vmem>>, %arg7: memref<8x128xf32, #tpu.memory_space<vmem>>) attributes {dimension_semantics = [#tpu.dimension_semantics<parallel>, #tpu.dimension_semantics<parallel>, #tpu.dimension_semantics<arbitrary>], iteration_bounds = array<i64: 1, 1, 1>, scalar_prefetch = 0 : i64, scratch_operands = 1 : i64, tpu.core_type = #tpu.core_type<tc>, window_params = [{transform_indices = @transform_0, window_bounds = array<i64: 8, 128>}, {transform_indices = @transform_1, window_bounds = array<i64: 128, 128>}, {transform_indices = @transform_2, window_bounds = array<i64: 1, 128>}, {transform_indices = @transform_3, window_bounds = array<i64: 8, 128>}]} {
    %c0_i32 = arith.constant 0 : i32
    %0 = arith.cmpi eq, %arg2, %c0_i32 : i32
    %1 = arith.extui %0 : i1 to i32
    %c0_i32_0 = arith.constant 0 : i32
    %2 = arith.cmpi ne, %1, %c0_i32_0 : i32
    scf.if %2 {
      %cst_10 = arith.constant 0.000000e+00 : f32
      %12 = vector.broadcast %cst_10 : f32 to vector<8x128xf32>
      %c0_11 = arith.constant 0 : index
      %c0_12 = arith.constant 0 : index
      %13 = vector.load %arg5[%c0_11, %c0_12] : memref<1x128xf32, #tpu.memory_space<vmem>>, vector<1x128xf32>
      %14 = vector.broadcast %13 : vector<1x128xf32> to vector<8x128xf32>
      %15 = arith.addf %12, %14 : vector<8x128xf32>
      %c0_13 = arith.constant 0 : index
      %c0_14 = arith.constant 0 : index
      %16 = vector.load %arg7[%c0_13, %c0_14] : memref<8x128xf32, #tpu.memory_space<vmem>>, vector<8x128xf32>
      tpu.vector_store %arg7[%c0_13, %c0_14], %15 {strides = array<i32>} : memref<8x128xf32, #tpu.memory_space<vmem>>, vector<8x128xf32>,
    } else {
    }
    %c0 = arith.constant 0 : index
    %c0_1 = arith.constant 0 : index
    %3 = vector.load %arg7[%c0, %c0_1] : memref<8x128xf32, #tpu.memory_space<vmem>>, vector<8x128xf32>
    %c0_2 = arith.constant 0 : index
    %c0_3 = arith.constant 0 : index
    %4 = vector.load %arg3[%c0_2, %c0_3] : memref<8x128xf32, #tpu.memory_space<vmem>>, vector<8x128xf32>
    %c0_4 = arith.constant 0 : index
    %c0_5 = arith.constant 0 : index
    %5 = vector.load %arg4[%c0_4, %c0_5] : memref<128x128xf32, #tpu.memory_space<vmem>>, vector<128x128xf32>
    %cst = arith.constant dense<0.000000e+00> : vector<8x128xf32>
    %6 = tpu.matmul %4, %5, %cst {dimension_numbers = #tpu.dot_dimension_numbers<[1], [0], [0], [1], [0, 0, 1, 1], [], []>} : vector<8x128xf32>, vector<128x128xf32>, vector<8x128xf32> -> vector<8x128xf32>
    %7 = arith.addf %3, %6 : vector<8x128xf32>
    %c0_6 = arith.constant 0 : index
    %c0_7 = arith.constant 0 : index
    %8 = vector.load %arg7[%c0_6, %c0_7] : memref<8x128xf32, #tpu.memory_space<vmem>>, vector<8x128xf32>
    tpu.vector_store %arg7[%c0_6, %c0_7], %7 {strides = array<i32>} : memref<8x128xf32, #tpu.memory_space<vmem>>, vector<8x128xf32>,
    %c0_i32_8 = arith.constant 0 : i32
    %9 = arith.cmpi eq, %arg2, %c0_i32_8 : i32
    %10 = arith.extui %9 : i1 to i32
    %c0_i32_9 = arith.constant 0 : i32
    %11 = arith.cmpi ne, %10, %c0_i32_9 : i32
    scf.if %11 {
      %c0_10 = arith.constant 0 : index
      %c0_11 = arith.constant 0 : index
      %12 = vector.load %arg7[%c0_10, %c0_11] : memref<8x128xf32, #tpu.memory_space<vmem>>, vector<8x128xf32>
      %c0_12 = arith.constant 0 : index
      %c0_13 = arith.constant 0 : index
      %13 = vector.load %arg6[%c0_12, %c0_13] : memref<8x128xf32, #tpu.memory_space<vmem>>, vector<8x128xf32>
      tpu.vector_store %arg6[%c0_12, %c0_13], %12 {strides = array<i32>} : memref<8x128xf32, #tpu.memory_space<vmem>>, vector<8x128xf32>,
    } else {
    }
    return
  }
  func.func @transform_0(%arg0: i32, %arg1: i32, %arg2: i32) -> (i32, i32) {
    %c0_i32 = arith.constant 0 : i32
    return %arg0, %arg2 : i32, i32
  }
  func.func @transform_1(%arg0: i32, %arg1: i32, %arg2: i32) -> (i32, i32) {
    %c0_i32 = arith.constant 0 : i32
    return %arg2, %arg1 : i32, i32
  }
  func.func @transform_2(%arg0: i32, %arg1: i32, %arg2: i32) -> (i32, i32) {
    %c0_i32 = arith.constant 0 : i32
    %c0_i32_0 = arith.constant 0 : i32
    return %c0_i32, %arg1 : i32, i32
  }
  func.func @transform_3(%arg0: i32, %arg1: i32, %arg2: i32) -> (i32, i32) {
    %c0_i32 = arith.constant 0 : i32
    return %arg0, %arg1 : i32, i32
  }
}

</mosaic_0001>

<bundles_post_ra>
// kernel: tpu_custom_call.1
= control target key start
LH: loop header
LB: loop body
LE: loop exit
PB: predicated region body
PF: predicated region fallthrough
CT: control target
= control target key end

     0   :  { %8 = vsyncpa [#allocation4], 0  ;;  %s239_s0 = inlined_call_operand.hbm [shape: f32[8,128], index: 0, kind: input, shape index: {}]   ;;  %s240_s1 = inlined_call_operand.hbm [shape: f32[128,128], index: 1, kind: input, shape index: {}]   ;;  %s241_s2 = inlined_call_operand.vmem [shape: f32[1,128], index: 2, kind: input, shape index: {}]   ;;  %s242_s3 = inlined_call_operand.hbm [shape: f32[8,128], index: 3, kind: output, shape index: {}]  }
   0x1   :  { %9 = vsyncpa [#allocation7], 0 }
   0x2   :  { %10 = vsyncpa [#allocation5], 0  ;;  %s16_s14 = sshll.u32 %s239_s0, 4  ;;  %s202_s15 = smov [#allocation3]   ;;  %s17_s14 = int_to_ptr.hbm [resolvable:$true] %s16_s14 }
   0x3   :  { %s18_s16 = sshll.u32 %s202_s15, 4  ;;  %s26_s19 = sshll.u32 %s240_s1, 4  ;;  %s19_s16 = int_to_ptr.vmem [resolvable:$true] %s18_s16  ;;  %s27_s19 = int_to_ptr.hbm [resolvable:$true] %s26_s19 }
   0x4   :  { %21 = dma.hbm_to_vmem [thread:$0]  %s17_s14, 128, %s19_s16, [#allocation4]  }
   0x5   :  { %s203_s20 = smov [#allocation6]   ;;  %s204_s22 = smov 128  }
   0x6   :  { %s28_s21 = sshll.u32 %s203_s20, 4  ;;  %s205_s23 = smov 8   ;;  %s29_s21 = int_to_ptr.vmem [resolvable:$true] %s28_s21 }
   0x7   :  { %34 = dma.hbm_to_vmem [thread:$0]  %s27_s19, 2048, %s29_s21, [#allocation7], %s204_s22, %s204_s22, %s205_s23  }
   0x8   :  { %196 = dma.done.wait [#allocation4], 128  }
   0x9   :  { %197 = vsyncadd [#allocation4], 4294967168 }
   0xa   :  { %198 = dma.done.wait [#allocation7], 2048  }
   0xb   :  { %199 = vsyncadd [#allocation7], 4294965248  ;;  %v72_v0 = vld [vmem:[#allocation6 + $0x78] sm:$0xff]  ;;  %v71_v1 = vld [vmem:[#allocation6 + $0x70] sm:$0xff]  ;;  %s206_s24 = smov [#allocation8]   ;;  %s107_s28 = sshll.u32 %s242_s3, 4  ;;  %s108_s28 = int_to_ptr.hbm [resolvable:$true] %s107_s28 }
   0xc   :  { %73 = vmatpush.msra.mxu0 %v72_v0  ;;  %v70_v2 = vld [vmem:[#allocation6 + $0x68] sm:$0xff]  ;;  %v69_v3 = vld [vmem:[#allocation6 + $0x60] sm:$0xff]  ;;  %v68_v4 = vld [vmem:[#allocation6 + $0x58] sm:$0xff]  ;;  %s105_s25 = sshll.u32 %s206_s24, 4  ;;  %s106_s25 = int_to_ptr.vmem [resolvable:$true] %s105_s25 }
   0xd   :  { %v67_v5 = vld [vmem:[#allocation6 + $0x50] sm:$0xff]  ;;  %v66_v6 = vld [vmem:[#allocation6 + $0x48] sm:$0xff]  ;;  %v65_v7 = vld [vmem:[#allocation6 + $0x40] sm:$0xff] }
   0xe   :  { %74 = vmatpush.msra.mxu0 %v71_v1  ;;  %v64_v8 = vld [vmem:[#allocation6 + $0x38] sm:$0xff]  ;;  %v63_v9 = vld [vmem:[#allocation6 + $0x30] sm:$0xff]  ;;  %v62_v10 = vld [vmem:[#allocation6 + $0x28] sm:$0xff] }
   0xf   :  { %v61_v11 = vld [vmem:[#allocation6 + $0x20] sm:$0xff]  ;;  %v60_v12 = vld [vmem:[#allocation6 + $0x18] sm:$0xff]  ;;  %v59_v13 = vld [vmem:[#allocation6 + $0x10] sm:$0xff] }
  0x10   :  { %75 = vmatpush.msra.mxu0 %v70_v2  ;;  %v58_v14 = vld [vmem:[#allocation6 + $0x8] sm:$0xff]  ;;  %v57_v15 = vld [vmem:[#allocation6] sm:$0xff]  ;;  %v56_v16 = vld [vmem:[#allocation3] sm:$0xff] }
  0x11   :  { %v123_v17 = vld [vmem:[%s241_s2] ss:$0 sm:$0xff] }
  0x12   :  { %76 = vmatpush.msra.mxu0 %v69_v3 }
  0x14   :  { %77 = vmatpush.msra.mxu0 %v68_v4 }
  0x16   :  { %78 = vmatpush.msra.mxu0 %v67_v5 }
  0x18   :  { %79 = vmatpush.msra.mxu0 %v66_v6 }
  0x1a   :  { %80 = vmatpush.msra.mxu0 %v65_v7 }
  0x1c   :  { %81 = vmatpush.msra.mxu0 %v64_v8 }
  0x1e   :  { %82 = vmatpush.msra.mxu0 %v63_v9 }
  0x20   :  { %83 = vmatpush.msra.mxu0 %v62_v10 }
  0x22   :  { %84 = vmatpush.msra.mxu0 %v61_v11 }
  0x24   :  { %85 = vmatpush.msra.mxu0 %v60_v12 }
  0x26   :  { %86 = vmatpush.msra.mxu0 %v59_v13 }
  0x28   :  { %87 = vmatpush.msra.mxu0 %v58_v14 }
  0x2a   :  { %88 = vmatpush.msra.mxu0 %v57_v15 }
  0x2b   :  { %89 = vmatmul.f32.vlgmr.msra.gmra.mxu0 %v56_v16 }
  0xa8   :  { %v90_v18 = vpop.f32.mrf.mxu0 }
  0xa9   :  { %v93_v19 = vadd.f32 %v123_v17, %v90_v18 }
  0xab   :  { %99 = vst [vmem:[#allocation8] sm:$0xff] %v93_v19 }
  0xac   :  { %110 = dma.vmem_to_hbm [thread:$0]  %s106_s25, 128, %s108_s28, [#allocation5]  }
  0xad   :  { %200 = dma.done.wait [#allocation5], 128  }
  0xae   :  { %201 = vsyncadd [#allocation5], 4294967168 }
  0xaf   :  { %115 = vsyncpa [#allocation4], 1 }
  0xb0   :  { %116 = vsyncpa [#allocation7], 1 }
  0xb1   :  { %117 = vsyncpa [#allocation5], 1 }

</bundles_post_ra>
